<compile_context>
chip_gen: v5e
topology: v5e:2x2
jax: 0.10.0
libtpu: 0.0.40
codegen_flags: <defaults>
</compile_context>

<pallas_src>
import math

import jax
import jax.numpy as jnp
from jax.experimental import pallas as pl
from jax.experimental.pallas import tpu as pltpu


# --------------------------------------------------------------------------- #
# Tile / VMEM sizing helpers
# --------------------------------------------------------------------------- #
def _tile_candidates(L, target):
    """Divisors of L (<= target), preferring multiples of 256, then 128, then 8."""
    seen, cands = set(), []
    for base in (256, 128, 8):
        t = (min(target, L) // base) * base
        while t >= base:
            if L % t == 0 and t not in seen:
                seen.add(t)
                cands.append(t)
            t -= base
    if L <= target and L not in seen:
        cands.insert(0, L)
    if not cands:                 # no multiple-of-8 divisor: block = full sequence
        cands = [L]
    return cands


def _attn_vmem_bytes(H, tq, tk, d, D, itemsize):
    """Rough per-core VMEM footprint of the attention kernel (bytes)."""
    pipelined = 2 * (H * tq * d + 2 * H * tk * d + tq * D) * itemsize  # q/k/v/out (2x buffered)
    constants = (H * d * D + D) * itemsize                             # wo/bo (single-buffered)
    scratch = (2 * H * tq + H * tq * d) * 4                            # f32 m/l/acc
    live = H * tq * tk * 4                                             # f32 score block
    return pipelined + constants + scratch + live


def _proj_vmem_bytes(H, tl, d, D, itemsize):
    pipelined = 2 * (3 * tl * D + 3 * H * tl * d) * itemsize           # x tiles + q/k/v tiles
    constants = 3 * (D * H * d + H * d) * itemsize                     # weights/biases (1x buffered)
    live = 3 * tl * H * d * 4                                          # f32 matmul results
    return pipelined + constants + live


def _vmem_limit(estimate):
    # Computed from the block math: raises v5e's 16 MiB default scoped limit when the
    # tiles need it, while staying below v7x's 64 MiB physical VMEM per TensorCore.
    return int(min(max(2 * estimate, 32 << 20), 60 << 20))


# --------------------------------------------------------------------------- #
# Kernel A: fused Q/K/V projections -> head-major (B, H, L, d) layout.
# Grid: (B, L//tl).  One wide (tl, D) @ (D, H*d) matmul per projection, split
# into per-head outputs with static lane slices.  x tiles are read from HBM once.
# --------------------------------------------------------------------------- #
def _qkv_proj_kernel(xq_ref, xk_ref, xv_ref,
                     wq_ref, bq_ref, wk_ref, bk_ref, wv_ref, bv_ref,
                     q_ref, k_ref, v_ref):
    H, d = q_ref.shape[1], q_ref.shape[3]

    def proj(x_ref, w_ref, b_ref, o_ref):
        y = jnp.dot(x_ref[0], w_ref[...], preferred_element_type=jnp.float32)
        y = y + b_ref[...]
        for h in range(H):                               # static unrolled head split
            o_ref[0, h] = y[:, h * d:(h + 1) * d].astype(o_ref.dtype)

    proj(xq_ref, wq_ref, bq_ref, q_ref)
    proj(xk_ref, wk_ref, bk_ref, k_ref)
    proj(xv_ref, wv_ref, bv_ref, v_ref)


# --------------------------------------------------------------------------- #
# Kernel B: flash attention with fused output projection.
# Grid: (B, L//tq, L//tk); last axis streams K/V with an online softmax.
# --------------------------------------------------------------------------- #
def _flash_attn_kernel(q_ref, k_ref, v_ref, wo_ref, bo_ref, out_ref,
                       m_s, l_s, acc_s):
    ki = pl.program_id(2)

    @pl.when(ki == 0)
    def _():
        m_s[...] = jnp.full(m_s.shape, -jnp.inf, m_s.dtype)
        l_s[...] = jnp.zeros(l_s.shape, l_s.dtype)
        acc_s[...] = jnp.zeros(acc_s.shape, acc_s.dtype)

    q = q_ref[0]              # (H, tq, d) -- already scaled by 1/sqrt(d_model)
    k = k_ref[0]              # (H, tk, d)
    v = v_ref[0]              # (H, tk, d)

    # Batched-head scores; contraction over the last dims (no explicit k.T).
    s = jnp.einsum('hqd,hkd->hqk', q, k, preferred_element_type=jnp.float32)

    m_prev = m_s[...]
    m_new = jnp.maximum(m_prev, s.max(axis=-1, keepdims=True))
    alpha = jnp.exp(m_prev - m_new)
    p = jnp.exp(s - m_new)

    l_s[...] = alpha * l_s[...] + p.sum(axis=-1, keepdims=True)
    acc_s[...] = alpha * acc_s[...] + jnp.einsum(
        'hqk,hkd->hqd', p.astype(v.dtype), v, preferred_element_type=jnp.float32)
    m_s[...] = m_new

    # dropout: identity (inference)

    @pl.when(ki == pl.num_programs(2) - 1)
    def _():
        H = acc_s.shape[0]
        inv_l = pl.reciprocal(l_s[...], approx=True)          # EUP slot: ~free
        ctx = (acc_s[...] * inv_l).astype(wo_ref.dtype)        # (H, tq, d)
        # Fused output projection, accumulated over heads straight into a single
        # (tq, D) f32 value on the MXU -- no (H, tq, D) intermediate materialized.
        out = jnp.dot(ctx[0], wo_ref[0], preferred_element_type=jnp.float32)
        for h in range(1, H):                                  # static unrolled
            out = out + jnp.dot(ctx[h], wo_ref[h],
                                preferred_element_type=jnp.float32)
        out_ref[0] = (out + bo_ref[...]).astype(out_ref.dtype)


def multihead_attention(xq, xk, xv, params, *, n_heads, d_model, seq_tile=256):
    """params: wq/wk/wv (D, D*H), bq/bk/bv (1, D*H), wo (D*H, D), bo (1, D)."""
    B, L, D = xq.shape
    assert D == d_model
    H, d = n_heads, d_model
    dtype = xq.dtype
    itemsize = jnp.dtype(dtype).itemsize
    scale = 1.0 / math.sqrt(float(d_model))          # temperature = sqrt(d_model)

    # Host-side weight prep: fold the softmax temperature into the Q projection and
    # cast everything to the activation dtype (keeps bf16 on the bf16 MXU path and
    # halves weight DMA / VMEM when x is bf16).
    wq2 = (params["wq"] * scale).astype(dtype)       # (D, H*d)
    bq2 = (params["bq"] * scale).astype(dtype)       # (1, H*d)
    wk2 = params["wk"].astype(dtype)
    bk2 = params["bk"].astype(dtype)
    wv2 = params["wv"].astype(dtype)
    bv2 = params["bv"].astype(dtype)
    wo3 = params["wo"].reshape(H, d, D).astype(dtype)   # rows h*d..(h+1)*d pair with head h
    bo2 = params["bo"].astype(dtype)                    # (1, D)

    budget = 44 << 20   # headroom under the smallest physical VMEM (v7x: 64 MiB / core)

    # ---------------- Kernel A: fused Q/K/V projections ---------------- #
    tl_cands = _tile_candidates(L, seq_tile)
    tl = next((t for t in tl_cands if _proj_vmem_bytes(H, t, d, D, itemsize) <= budget),
              tl_cands[-1])
    proj_est = _proj_vmem_bytes(H, tl, d, D, itemsize)

    x_spec = pl.BlockSpec((1, tl, D), lambda b, l: (b, l, 0))
    w_spec = pl.BlockSpec((D, H * d), lambda b, l: (0, 0), pipeline_mode=pl.Buffered(1))
    b_spec = pl.BlockSpec((1, H * d), lambda b, l: (0, 0), pipeline_mode=pl.Buffered(1))
    qkv_out_spec = pl.BlockSpec((1, H, tl, d), lambda b, l: (b, 0, l, 0))

    q, k, v = pl.pallas_call(
        _qkv_proj_kernel,
        out_shape=tuple(jax.ShapeDtypeStruct((B, H, L, d), dtype) for _ in range(3)),
        grid_spec=pltpu.PrefetchScalarGridSpec(
            num_scalar_prefetch=0,
            grid=(B, L // tl),
            in_specs=[x_spec, x_spec, x_spec,
                      w_spec, b_spec, w_spec, b_spec, w_spec, b_spec],
            out_specs=[qkv_out_spec, qkv_out_spec, qkv_out_spec],
        ),
        compiler_params=pltpu.CompilerParams(
            dimension_semantics=("parallel", "parallel"),
            vmem_limit_bytes=_vmem_limit(proj_est)),
    )(xq, xk, xv, wq2, bq2, wk2, bk2, wv2, bv2)

    # ---------------- Kernel B: flash attention + fused output projection ------- #
    tq_cands = _tile_candidates(L, seq_tile)
    tq = next((t for t in tq_cands if _attn_vmem_bytes(H, t, t, d, D, itemsize) <= budget),
              tq_cands[-1])
    tk = tq
    attn_est = _attn_vmem_bytes(H, tq, tk, d, D, itemsize)
    assert attn_est <= (60 << 20), (
        f"attention tiles ({tq},{tk}) need ~{attn_est >> 20} MiB VMEM; reduce seq_tile")

    # Keep at least 2 parallel grid steps so both v7x TensorCores get work.
    if B * (L // tq) < 2:
        for cand in (tq // 2, tq // 4):
            if cand >= 128 and L % cand == 0:
                tq = cand
                break
    NQ, NK = L // tq, L // tk

    out = pl.pallas_call(
        _flash_attn_kernel,
        out_shape=jax.ShapeDtypeStruct((B, L, D), dtype),
        grid_spec=pltpu.PrefetchScalarGridSpec(
            num_scalar_prefetch=0,
            grid=(B, NQ, NK),
            in_specs=[
                pl.BlockSpec((1, H, tq, d), lambda b, qi, ki: (b, 0, qi, 0)),   # q
                pl.BlockSpec((1, H, tk, d), lambda b, qi, ki: (b, 0, ki, 0)),   # k
                pl.BlockSpec((1, H, tk, d), lambda b, qi, ki: (b, 0, ki, 0)),   # v
                pl.BlockSpec((H, d, D), lambda b, qi, ki: (0, 0, 0),            # wo (const)
                             pipeline_mode=pl.Buffered(1)),
                pl.BlockSpec((1, D), lambda b, qi, ki: (0, 0),                  # bo (const)
                             pipeline_mode=pl.Buffered(1)),
            ],
            out_specs=pl.BlockSpec((1, tq, D), lambda b, qi, ki: (b, qi, 0)),
            scratch_shapes=[
                pltpu.VMEM((H, tq, 1), jnp.float32),   # running max  m
                pltpu.VMEM((H, tq, 1), jnp.float32),   # running sum  l
                pltpu.VMEM((H, tq, d), jnp.float32),   # running acc
            ],
        ),
        compiler_params=pltpu.CompilerParams(
            dimension_semantics=("parallel", "parallel", "arbitrary"),
            vmem_limit_bytes=_vmem_limit(attn_est)),
    )(q, k, v, wo3, bo2)

    return out


def _reference(xq, xk, xv, params, *, n_heads, d_model):
    """Pure-JAX reference mirroring the PyTorch forward (eval mode)."""
    B, L, D = xq.shape
    q = xq @ params["wq"] + params["bq"]
    k = xk @ params["wk"] + params["bk"]
    v = xv @ params["wv"] + params["bv"]
    q = q.reshape(B, L, n_heads, D).transpose(0, 2, 1, 3)
    k = k.reshape(B, L, n_heads, D).transpose(0, 2, 1, 3)
    v = v.reshape(B, L, n_heads, D).transpose(0, 2, 1, 3)
    attn = jnp.einsum("bhld,bhmd->bhlm", q, k) / jnp.sqrt(jnp.float32(d_model))
    attn = jax.nn.softmax(attn, axis=-1)
    ctx = jnp.einsum("bhlm,bhmd->bhld", attn, v)
    ctx = ctx.transpose(0, 2, 1, 3).reshape(B, L, n_heads * D)
    return ctx @ params["wo"] + params["bo"]


if __name__ == "__main__":
    # Small deterministic problem.
    B, L, d_model, n_heads = 2, 8, 32, 2
    DH = d_model * n_heads

    key = jax.random.PRNGKey(0)
    ks = jax.random.split(key, 12)

    def lin_init(kw, kb, fan_in, shape_w, shape_b):
        bound = 1.0 / math.sqrt(fan_in)
        w = jax.random.uniform(kw, shape_w, jnp.float32, -bound, bound)
        b = jax.random.uniform(kb, shape_b, jnp.float32, -bound, bound)
        return w, b

    wq, bq = lin_init(ks[0], ks[1], d_model, (d_model, DH), (1, DH))
    wk, bk = lin_init(ks[2], ks[3], d_model, (d_model, DH), (1, DH))
    wv, bv = lin_init(ks[4], ks[5], d_model, (d_model, DH), (1, DH))
    wo, bo = lin_init(ks[6], ks[7], DH, (DH, d_model), (1, d_model))

    params = dict(wq=wq, bq=bq, wk=wk, bk=bk, wv=wv, bv=bv, wo=wo, bo=bo)

    xq = jax.random.normal(ks[8], (B, L, d_model), jnp.float32)
    xk = jax.random.normal(ks[9], (B, L, d_model), jnp.float32)
    xv = jax.random.normal(ks[10], (B, L, d_model), jnp.float32)

    out = multihead_attention(xq, xk, xv, params, n_heads=n_heads, d_model=d_model)
    out = jax.block_until_ready(out)

    ref = _reference(xq, xk, xv, params, n_heads=n_heads, d_model=d_model)
    assert out.shape == (B, L, d_model)
    # Tolerance covers the approx (EUP) reciprocal + online-softmax reassociation.
    assert jnp.allclose(out, ref, atol=2e-3, rtol=2e-3), "mismatch vs reference"

    print("KERNEL_OK")
</pallas_src>

<mosaic_0001>
module attributes {stable_mosaic.version = 11 : i64} {
  func.func @_qkv_proj_kernel(%arg0: i32, %arg1: i32, %arg2: memref<1x8x32xf32, #tpu.memory_space<vmem>>, %arg3: memref<1x8x32xf32, #tpu.memory_space<vmem>>, %arg4: memref<1x8x32xf32, #tpu.memory_space<vmem>>, %arg5: memref<32x64xf32, #tpu.memory_space<vmem>>, %arg6: memref<1x64xf32, #tpu.memory_space<vmem>>, %arg7: memref<32x64xf32, #tpu.memory_space<vmem>>, %arg8: memref<1x64xf32, #tpu.memory_space<vmem>>, %arg9: memref<32x64xf32, #tpu.memory_space<vmem>>, %arg10: memref<1x64xf32, #tpu.memory_space<vmem>>, %arg11: memref<1x2x8x32xf32, #tpu.memory_space<vmem>>, %arg12: memref<1x2x8x32xf32, #tpu.memory_space<vmem>>, %arg13: memref<1x2x8x32xf32, #tpu.memory_space<vmem>>) attributes {dimension_semantics = [#tpu.dimension_semantics<parallel>, #tpu.dimension_semantics<parallel>], iteration_bounds = array<i64: 2, 1>, scalar_prefetch = 0 : i64, scratch_operands = 0 : i64, tpu.core_type = #tpu.core_type<tc>, window_params = [{transform_indices = @transform_0, window_bounds = array<i64: 1, 8, 32>}, {transform_indices = @transform_1, window_bounds = array<i64: 1, 8, 32>}, {transform_indices = @transform_2, window_bounds = array<i64: 1, 8, 32>}, {pipeline_mode = #tpu.pipeline_mode<synchronous>, transform_indices = @transform_3, window_bounds = array<i64: 32, 64>}, {pipeline_mode = #tpu.pipeline_mode<synchronous>, transform_indices = @transform_4, window_bounds = array<i64: 1, 64>}, {pipeline_mode = #tpu.pipeline_mode<synchronous>, transform_indices = @transform_5, window_bounds = array<i64: 32, 64>}, {pipeline_mode = #tpu.pipeline_mode<synchronous>, transform_indices = @transform_6, window_bounds = array<i64: 1, 64>}, {pipeline_mode = #tpu.pipeline_mode<synchronous>, transform_indices = @transform_7, window_bounds = array<i64: 32, 64>}, {pipeline_mode = #tpu.pipeline_mode<synchronous>, transform_indices = @transform_8, window_bounds = array<i64: 1, 64>}, {transform_indices = @transform_9, window_bounds = array<i64: 1, 2, 8, 32>}, {transform_indices = @transform_10, window_bounds = array<i64: 1, 2, 8, 32>}, {transform_indices = @transform_11, window_bounds = array<i64: 1, 2, 8, 32>}]} {
    %c0 = arith.constant 0 : index
    %c0_0 = arith.constant 0 : index
    %c0_1 = arith.constant 0 : index
    %0 = vector.load %arg2[%c0, %c0_0, %c0_1] : memref<1x8x32xf32, #tpu.memory_space<vmem>>, vector<1x8x32xf32>
    %1 = vector.shape_cast %0 : vector<1x8x32xf32> to vector<8x32xf32>
    %c0_2 = arith.constant 0 : index
    %c0_3 = arith.constant 0 : index
    %2 = vector.load %arg5[%c0_2, %c0_3] : memref<32x64xf32, #tpu.memory_space<vmem>>, vector<32x64xf32>
    %cst = arith.constant dense<0.000000e+00> : vector<8x64xf32>
    %3 = tpu.matmul %1, %2, %cst {dimension_numbers = #tpu.dot_dimension_numbers<[1], [0], [0], [1], [0, 0, 1, 1], [], []>} : vector<8x32xf32>, vector<32x64xf32>, vector<8x64xf32> -> vector<8x64xf32>
    %c0_4 = arith.constant 0 : index
    %c0_5 = arith.constant 0 : index
    %4 = vector.load %arg6[%c0_4, %c0_5] : memref<1x64xf32, #tpu.memory_space<vmem>>, vector<1x64xf32>
    %5 = vector.broadcast %4 : vector<1x64xf32> to vector<8x64xf32>
    %6 = arith.addf %3, %5 : vector<8x64xf32>
    %7 = vector.extract_strided_slice %6 {offsets = [0, 0], sizes = [8, 32], strides = [1, 1]} : vector<8x64xf32> to vector<8x32xf32>
    %c0_6 = arith.constant 0 : index
    %c0_7 = arith.constant 0 : index
    %c0_8 = arith.constant 0 : index
    %c0_9 = arith.constant 0 : index
    %8 = vector.load %arg11[%c0_6, %c0_7, %c0_8, %c0_9] : memref<1x2x8x32xf32, #tpu.memory_space<vmem>>, vector<1x1x8x32xf32>
    %9 = vector.shape_cast %8 : vector<1x1x8x32xf32> to vector<8x32xf32>
    %10 = vector.shape_cast %7 : vector<8x32xf32> to vector<1x1x8x32xf32>
    tpu.vector_store %arg11[%c0_6, %c0_7, %c0_8, %c0_9], %10 {strides = array<i32>} : memref<1x2x8x32xf32, #tpu.memory_space<vmem>>, vector<1x1x8x32xf32>,
    %11 = vector.extract_strided_slice %6 {offsets = [0, 32], sizes = [8, 32], strides = [1, 1]} : vector<8x64xf32> to vector<8x32xf32>
    %c0_10 = arith.constant 0 : index
    %c1 = arith.constant 1 : index
    %c0_11 = arith.constant 0 : index
    %c0_12 = arith.constant 0 : index
    %12 = vector.load %arg11[%c0_10, %c1, %c0_11, %c0_12] : memref<1x2x8x32xf32, #tpu.memory_space<vmem>>, vector<1x1x8x32xf32>
    %13 = vector.shape_cast %12 : vector<1x1x8x32xf32> to vector<8x32xf32>
    %14 = vector.shape_cast %11 : vector<8x32xf32> to vector<1x1x8x32xf32>
    tpu.vector_store %arg11[%c0_10, %c1, %c0_11, %c0_12], %14 {strides = array<i32>} : memref<1x2x8x32xf32, #tpu.memory_space<vmem>>, vector<1x1x8x32xf32>,
    %c0_13 = arith.constant 0 : index
    %c0_14 = arith.constant 0 : index
    %c0_15 = arith.constant 0 : index
    %15 = vector.load %arg3[%c0_13, %c0_14, %c0_15] : memref<1x8x32xf32, #tpu.memory_space<vmem>>, vector<1x8x32xf32>
    %16 = vector.shape_cast %15 : vector<1x8x32xf32> to vector<8x32xf32>
    %c0_16 = arith.constant 0 : index
    %c0_17 = arith.constant 0 : index
    %17 = vector.load %arg7[%c0_16, %c0_17] : memref<32x64xf32, #tpu.memory_space<vmem>>, vector<32x64xf32>
    %cst_18 = arith.constant dense<0.000000e+00> : vector<8x64xf32>
    %18 = tpu.matmul %16, %17, %cst_18 {dimension_numbers = #tpu.dot_dimension_numbers<[1], [0], [0], [1], [0, 0, 1, 1], [], []>} : vector<8x32xf32>, vector<32x64xf32>, vector<8x64xf32> -> vector<8x64xf32>
    %c0_19 = arith.constant 0 : index
    %c0_20 = arith.constant 0 : index
    %19 = vector.load %arg8[%c0_19, %c0_20] : memref<1x64xf32, #tpu.memory_space<vmem>>, vector<1x64xf32>
    %20 = vector.broadcast %19 : vector<1x64xf32> to vector<8x64xf32>
    %21 = arith.addf %18, %20 : vector<8x64xf32>
    %22 = vector.extract_strided_slice %21 {offsets = [0, 0], sizes = [8, 32], strides = [1, 1]} : vector<8x64xf32> to vector<8x32xf32>
    %c0_21 = arith.constant 0 : index
    %c0_22 = arith.constant 0 : index
    %c0_23 = arith.constant 0 : index
    %c0_24 = arith.constant 0 : index
    %23 = vector.load %arg12[%c0_21, %c0_22, %c0_23, %c0_24] : memref<1x2x8x32xf32, #tpu.memory_space<vmem>>, vector<1x1x8x32xf32>
    %24 = vector.shape_cast %23 : vector<1x1x8x32xf32> to vector<8x32xf32>
    %25 = vector.shape_cast %22 : vector<8x32xf32> to vector<1x1x8x32xf32>
    tpu.vector_store %arg12[%c0_21, %c0_22, %c0_23, %c0_24], %25 {strides = array<i32>} : memref<1x2x8x32xf32, #tpu.memory_space<vmem>>, vector<1x1x8x32xf32>,
    %26 = vector.extract_strided_slice %21 {offsets = [0, 32], sizes = [8, 32], strides = [1, 1]} : vector<8x64xf32> to vector<8x32xf32>
    %c0_25 = arith.constant 0 : index
    %c1_26 = arith.constant 1 : index
    %c0_27 = arith.constant 0 : index
    %c0_28 = arith.constant 0 : index
    %27 = vector.load %arg12[%c0_25, %c1_26, %c0_27, %c0_28] : memref<1x2x8x32xf32, #tpu.memory_space<vmem>>, vector<1x1x8x32xf32>
    %28 = vector.shape_cast %27 : vector<1x1x8x32xf32> to vector<8x32xf32>
    %29 = vector.shape_cast %26 : vector<8x32xf32> to vector<1x1x8x32xf32>
    tpu.vector_store %arg12[%c0_25, %c1_26, %c0_27, %c0_28], %29 {strides = array<i32>} : memref<1x2x8x32xf32, #tpu.memory_space<vmem>>, vector<1x1x8x32xf32>,
    %c0_29 = arith.constant 0 : index
    %c0_30 = arith.constant 0 : index
    %c0_31 = arith.constant 0 : index
    %30 = vector.load %arg4[%c0_29, %c0_30, %c0_31] : memref<1x8x32xf32, #tpu.memory_space<vmem>>, vector<1x8x32xf32>
    %31 = vector.shape_cast %30 : vector<1x8x32xf32> to vector<8x32xf32>
    %c0_32 = arith.constant 0 : index
    %c0_33 = arith.constant 0 : index
    %32 = vector.load %arg9[%c0_32, %c0_33] : memref<32x64xf32, #tpu.memory_space<vmem>>, vector<32x64xf32>
    %cst_34 = arith.constant dense<0.000000e+00> : vector<8x64xf32>
    %33 = tpu.matmul %31, %32, %cst_34 {dimension_numbers = #tpu.dot_dimension_numbers<[1], [0], [0], [1], [0, 0, 1, 1], [], []>} : vector<8x32xf32>, vector<32x64xf32>, vector<8x64xf32> -> vector<8x64xf32>
    %c0_35 = arith.constant 0 : index
    %c0_36 = arith.constant 0 : index
    %34 = vector.load %arg10[%c0_35, %c0_36] : memref<1x64xf32, #tpu.memory_space<vmem>>, vector<1x64xf32>
    %35 = vector.broadcast %34 : vector<1x64xf32> to vector<8x64xf32>
    %36 = arith.addf %33, %35 : vector<8x64xf32>
    %37 = vector.extract_strided_slice %36 {offsets = [0, 0], sizes = [8, 32], strides = [1, 1]} : vector<8x64xf32> to vector<8x32xf32>
    %c0_37 = arith.constant 0 : index
    %c0_38 = arith.constant 0 : index
    %c0_39 = arith.constant 0 : index
    %c0_40 = arith.constant 0 : index
    %38 = vector.load %arg13[%c0_37, %c0_38, %c0_39, %c0_40] : memref<1x2x8x32xf32, #tpu.memory_space<vmem>>, vector<1x1x8x32xf32>
    %39 = vector.shape_cast %38 : vector<1x1x8x32xf32> to vector<8x32xf32>
    %40 = vector.shape_cast %37 : vector<8x32xf32> to vector<1x1x8x32xf32>
    tpu.vector_store %arg13[%c0_37, %c0_38, %c0_39, %c0_40], %40 {strides = array<i32>} : memref<1x2x8x32xf32, #tpu.memory_space<vmem>>, vector<1x1x8x32xf32>,
    %41 = vector.extract_strided_slice %36 {offsets = [0, 32], sizes = [8, 32], strides = [1, 1]} : vector<8x64xf32> to vector<8x32xf32>
    %c0_41 = arith.constant 0 : index
    %c1_42 = arith.constant 1 : index
    %c0_43 = arith.constant 0 : index
    %c0_44 = arith.constant 0 : index
    %42 = vector.load %arg13[%c0_41, %c1_42, %c0_43, %c0_44] : memref<1x2x8x32xf32, #tpu.memory_space<vmem>>, vector<1x1x8x32xf32>
    %43 = vector.shape_cast %42 : vector<1x1x8x32xf32> to vector<8x32xf32>
    %44 = vector.shape_cast %41 : vector<8x32xf32> to vector<1x1x8x32xf32>
    tpu.vector_store %arg13[%c0_41, %c1_42, %c0_43, %c0_44], %44 {strides = array<i32>} : memref<1x2x8x32xf32, #tpu.memory_space<vmem>>, vector<1x1x8x32xf32>,
    return
  }
  func.func @transform_0(%arg0: i32, %arg1: i32) -> (i32, i32, i32) {
    %c0_i32 = arith.constant 0 : i32
    %c0_i32_0 = arith.constant 0 : i32
    return %arg0, %arg1, %c0_i32 : i32, i32, i32
  }
  func.func @transform_1(%arg0: i32, %arg1: i32) -> (i32, i32, i32) {
    %c0_i32 = arith.constant 0 : i32
    %c0_i32_0 = arith.constant 0 : i32
    return %arg0, %arg1, %c0_i32 : i32, i32, i32
  }
  func.func @transform_2(%arg0: i32, %arg1: i32) -> (i32, i32, i32) {
    %c0_i32 = arith.constant 0 : i32
    %c0_i32_0 = arith.constant 0 : i32
    return %arg0, %arg1, %c0_i32 : i32, i32, i32
  }
  func.func @transform_3(%arg0: i32, %arg1: i32) -> (i32, i32) {
    %c0_i32 = arith.constant 0 : i32
    %c0_i32_0 = arith.constant 0 : i32
    %c0_i32_1 = arith.constant 0 : i32
    return %c0_i32, %c0_i32_0 : i32, i32
  }
  func.func @transform_4(%arg0: i32, %arg1: i32) -> (i32, i32) {
    %c0_i32 = arith.constant 0 : i32
    %c0_i32_0 = arith.constant 0 : i32
    %c0_i32_1 = arith.constant 0 : i32
    return %c0_i32, %c0_i32_0 : i32, i32
  }
  func.func @transform_5(%arg0: i32, %arg1: i32) -> (i32, i32) {
    %c0_i32 = arith.constant 0 : i32
    %c0_i32_0 = arith.constant 0 : i32
    %c0_i32_1 = arith.constant 0 : i32
    return %c0_i32, %c0_i32_0 : i32, i32
  }
  func.func @transform_6(%arg0: i32, %arg1: i32) -> (i32, i32) {
    %c0_i32 = arith.constant 0 : i32
    %c0_i32_0 = arith.constant 0 : i32
    %c0_i32_1 = arith.constant 0 : i32
    return %c0_i32, %c0_i32_0 : i32, i32
  }
  func.func @transform_7(%arg0: i32, %arg1: i32) -> (i32, i32) {
    %c0_i32 = arith.constant 0 : i32
    %c0_i32_0 = arith.constant 0 : i32
    %c0_i32_1 = arith.constant 0 : i32
    return %c0_i32, %c0_i32_0 : i32, i32
  }
  func.func @transform_8(%arg0: i32, %arg1: i32) -> (i32, i32) {
    %c0_i32 = arith.constant 0 : i32
    %c0_i32_0 = arith.constant 0 : i32
    %c0_i32_1 = arith.constant 0 : i32
    return %c0_i32, %c0_i32_0 : i32, i32
  }
  func.func @transform_9(%arg0: i32, %arg1: i32) -> (i32, i32, i32, i32) {
    %c0_i32 = arith.constant 0 : i32
    %c0_i32_0 = arith.constant 0 : i32
    %c0_i32_1 = arith.constant 0 : i32
    return %arg0, %c0_i32, %arg1, %c0_i32_0 : i32, i32, i32, i32
  }
  func.func @transform_10(%arg0: i32, %arg1: i32) -> (i32, i32, i32, i32) {
    %c0_i32 = arith.constant 0 : i32
    %c0_i32_0 = arith.constant 0 : i32
    %c0_i32_1 = arith.constant 0 : i32
    return %arg0, %c0_i32, %arg1, %c0_i32_0 : i32, i32, i32, i32
  }
  func.func @transform_11(%arg0: i32, %arg1: i32) -> (i32, i32, i32, i32) {
    %c0_i32 = arith.constant 0 : i32
    %c0_i32_0 = arith.constant 0 : i32
    %c0_i32_1 = arith.constant 0 : i32
    return %arg0, %c0_i32, %arg1, %c0_i32_0 : i32, i32, i32, i32
  }
}

</mosaic_0001>

<bundles_post_ra>
// kernel: tpu_custom_call.1
= control target key start
LH: loop header
LB: loop body
LE: loop exit
PB: predicated region body
PF: predicated region fallthrough
CT: control target
= control target key end

     0   :  { %s1864_s0 = inlined_call_operand.hbm [shape: f32[2,8,32], index: 0, kind: input, shape index: {}]   ;;  %s1865_s1 = inlined_call_operand.hbm [shape: f32[2,8,32], index: 1, kind: input, shape index: {}]   ;;  %s1866_s2 = inlined_call_operand.hbm [shape: f32[2,8,32], index: 2, kind: input, shape index: {}]   ;;  %s1867_s3 = inlined_call_operand.hbm [shape: f32[32,64], index: 3, kind: input, shape index: {}]   ;;  %s1868_s4 = inlined_call_operand.vmem [shape: f32[1,64], index: 4, kind: input, shape index: {}]   ;;  %s1869_s5 = inlined_call_operand.hbm [shape: f32[32,64], index: 5, kind: input, shape index: {}]   ;;  %s1870_s6 = inlined_call_operand.vmem [shape: f32[1,64], index: 6, kind: input, shape index: {}]   ;;  %s1871_s7 = inlined_call_operand.hbm [shape: f32[32,64], index: 7, kind: input, shape index: {}]   ;;  %s1872_s8 = inlined_call_operand.vmem [shape: f32[1,64], index: 8, kind: input, shape index: {}]   ;;  %s1873_s9 = inlined_call_operand.hbm [shape: f32[2,2,8,32], index: 9, kind: output, shape index: {0}]   ;;  %s1874_s10 = inlined_call_operand.hbm [shape: f32[2,2,8,32], index: 10, kind: output, shape index: {1}]   ;;  %s1875_s11 = inlined_call_operand.hbm [shape: f32[2,2,8,32], index: 11, kind: output, shape index: {2}]  }
   0x1   :  { %1893 = sst [smem:[#allocation30_spill]] %s1864_s0 }
   0x2   :  { %1894 = sst [smem:[#allocation31_spill]] %s1865_s1 }
   0x3   :  { %1895 = sst [smem:[#allocation32_spill]] %s1866_s2 }
   0x4   :  { %1896 = sst [smem:[#allocation33_spill]] %s1867_s3 }
   0x5   :  { %1897 = sst [smem:[#allocation34_spill]] %s1869_s5 }
   0x6   :  { %1898 = sst [smem:[#allocation35_spill]] %s1871_s7 }
   0x7   :  { %1899 = sst [smem:[#allocation36_spill]] %s1872_s8 }
   0x8   :  { %1900 = sst [smem:[#allocation37_spill]] %s1873_s9 }
   0x9   :  { %1901 = sst [smem:[#allocation38_spill]] %s1874_s10 }
   0xa   :  { %1902 = sst [smem:[#allocation39_spill]] %s1875_s11 }
   0xb   :  { %17 = vsyncpa [#allocation3], 0 }
   0xc   :  { %19 = vsyncpa [#allocation3 + $0x1], 0 }
   0xd   :  { %20 = vsyncpa [#allocation6], 0 }
   0xe   :  { %22 = vsyncpa [#allocation6 + $0x1], 0 }
   0xf   :  { %23 = vsyncpa [#allocation9], 0 }
  0x10   :  { %24 = vsyncpa [#allocation12], 0 }
  0x11   :  { %25 = vsyncpa [#allocation4], 0 }
  0x12   :  { %27 = vsyncpa [#allocation4 + $0x1], 0 }
  0x13   :  { %28 = vsyncpa [#allocation15], 0 }
  0x14   :  { %30 = vsyncpa [#allocation15 + $0x1], 0  ;;  %s1548_s17 = smov 0   ;;  %s1550_s18 = smov 0  }
  0x15   :  { %s1552_s19 = smov 0   ;;  %s1554_s20 = smov 0  }
  0x16   :  { %s1556_s21 = smov 0   ;;  %s1558_s22 = smov 0  }
  0x17 LB: > { %1903 = sst [smem:[#allocation23_spill]] %s1458_s17  ;;  %s1579_s23 = sadd.s32 4294967295, %s1478_s22   ;;  %s1478_s22 = sphi %s1558_s22, %s36_s22   ;;  %s1474_s21 = sphi %s1556_s21, %s1938_s21   ;;  %s1470_s20 = sphi %s1554_s20, %s1937_s20   ;;  %s1466_s19 = sphi %s1552_s19, %s1941_s19   ;;  %s1462_s18 = sphi %s1550_s18, %s1940_s18   ;;  %s1458_s17 = sphi %s1548_s17, %s1939_s17  }
  0x18   : > { %1904 = sst [smem:[#allocation24_spill]] %s1474_s21  ;;  %p982_p0 = scmp.ge.s32.totalorder %s1478_s22, 1 }
  0x19   : > { %1905 = sst [smem:[#allocation25_spill]] %s1478_s22  ;;  %p71_p1 = scmp.eq.s32.totalorder %s1579_s23, 0 }
  0x1a   : > { %p347_p2 = scmp.lt.s32.totalorder %s1478_s22, 3  ;;  %s1906_s3 = sld [smem:[#allocation33_spill]] }
  0x1b   : > { %s1480_s28 = smov [#allocation8]   ;;  %p986_p6 = scmp.ge.s32.totalorder %s1478_s22, 2 }
  0x1c   : > { %p1587_p3 = pnand %p982_p0, %p347_p2  ;;  %s360_s29 = sshll.u32 %s1480_s28, 4  ;;  %s361_s29 = int_to_ptr.vmem [resolvable:$true] %s360_s29 }
  0x1d   : > { %s1876_s12 = smov 128   ;;  %s1878_s13 = smov 8  }
  0x1e   : > { %p1047_p4 = pneg %p1587_p3  ;;  %s1881_s14 = sadd.s32 4294967294, %s1478_s22  }
  0x1f   : > { %s48_s15 = sadd.s32 1, %s1474_s21  ;;  %s57_s16 = sadd.s32 1, %s1466_s19 }
  0x20   : > { %s358_s26 = sshll.u32 %s1906_s3, 4  ;;  %p1595_p5 = pnand %p1047_p4, %p71_p1  ;;  %s359_s26 = int_to_ptr.hbm [resolvable:$true] %s358_s26 }
  0x21   : > { %p50_p7 = scmp.ge.s32.totalorder %s48_s15, 2  ;;  %p64_p8 = scmp.ne.s32.totalorder %s1466_s19, %s1462_s18 }
  0x22   : > { %1050 = dma.hbm_to_vmem [thread:$0]  (!%p1595_p5), %s359_s26, 512, %s361_s29, [#allocation9], %s1876_s12, %s1876_s12, %s1878_s13  }
  0x23   : > { %p65_p9 = scmp.eq.s32.totalorder %s1478_s22, 0  ;;  %p70_p10 = scmp.ne.s32.totalorder %s1462_s18, %s1458_s17 }
  0x24   : > { %s1943_s15 = smov (%p50_p7, %s48_s15), 0  ;;  %p278_p13 = scmp.eq.s32.totalorder %s1579_s23, 1 }
  0x25   : > { %1909 = sst [smem:[#allocation26_spill]] %s1943_s15  ;;  %p1615_p11 = por %p65_p9, %p64_p8 }
  0x26   : > { %p1621_p12 = por %p71_p1, %p70_p10  ;;  %s52_s26 = ssub.s32 %s1474_s21, %s1943_s15 }
  0x27   : > { %p55_p0 = scmp.eq.s32.totalorder %s52_s26, 0  ;;  %p284_p2 = scmp.eq.s32.totalorder %s1881_s14, 1 }
  0x28   : > { %p1630_p4 = por %p278_p13, %p64_p8  ;;  %p1080_p7 = scmp.lt.s32.totalorder %s1478_s22, 2 }
  0x29   : > { %s1636_s29 = scalar_select %p55_p0, %s1466_s19, %s57_s16  }
  0x2a   : > { %s1912_s28 = scalar_select %p1630_p4, 1, 0 }
  0x2b   : > { %1914 = sst [smem:[#allocation28_spill]] %s1636_s29  ;;  %p1638_p9 = por %p284_p2, %p70_p10 }
  0x2c   : > { %1913 = sst [smem:[#allocation27_spill]] %s1912_s28  ;;  %s1885_s13 = sand.u32 1, %s1466_s19  }
  0x2d   : > { %s1915_s12 = scalar_select %p1638_p9, 1, 0 }
  0x2e   : > { %s1645_s3 = sshll.u32 %s1885_s13, 3  ;;  %s1648_s15 = sshll.u32 %s1474_s21, 3 }
  0x2f   : > { %1916 = sst [smem:[#allocation29_spill]] %s1915_s12  ;;  %p1652_p8 = pnand %p1080_p7, %p1615_p11 }
  0x30   : > { %s431_s16 = sand.u32 1, %s1478_s22   ;;  %s1918_s1 = sld [smem:[#allocation31_spill]] }
  0x31   : > { %s435_s9 = scalar_lea.vmem [#allocation5], %s1645_s3  ;;  %s1662_s24 = scalar_lea.sflag [#allocation6], %s431_s16 }
  0x32   : > { %s444_s13 = sshll.u32 %s435_s9, 4  ;;  %s1919_s5 = sld [smem:[#allocation34_spill]]  ;;  %s445_s13 = int_to_ptr.vmem [resolvable:$true] %s444_s13 }
  0x33   : > { %s1483_s14 = smov [#allocation10]   ;;  %s1920_s7 = sld [smem:[#allocation35_spill]] }
  0x34   : > { %s1921_s16 = smov 8   ;;  %s1922_s28 = smov 128  }
  0x35   : > { %s1484_s11 = smov [#allocation11]   ;;  %s1923_s0 = sld [smem:[#allocation30_spill]] }
  0x36   : > { %s440_s12 = scalar_lea.hbm %s1918_s1, %s1648_s15  ;;  %s415_s9 = scalar_lea.vmem [#allocation2], %s1645_s3 }
  0x37   : > { %s442_s17 = sshll.u32 %s440_s12, 4  ;;  %s377_s12 = sshll.u32 %s1483_s14, 4  ;;  %s443_s17 = int_to_ptr.hbm [resolvable:$true] %s442_s17  ;;  %s378_s12 = int_to_ptr.vmem [resolvable:$true] %s377_s12 }
  0x38   : > { %1063 = dma.hbm_to_vmem [thread:$0]  (!%p1652_p8), %s443_s17, 128, %s445_s13, %s1662_s24  }
  0x39   : > { %s375_s22 = sshll.u32 %s1919_s5, 4  ;;  %s392_s1 = sshll.u32 %s1920_s7, 4  ;;  %s376_s22 = int_to_ptr.hbm [resolvable:$true] %s375_s22  ;;  %s393_s1 = int_to_ptr.hbm [resolvable:$true] %s392_s1 }
  0x3a   : > { %1053 = dma.hbm_to_vmem [thread:$0]  (!%p1595_p5), %s376_s22, 512, %s378_s12, [#allocation9], %s1922_s28, %s1922_s28, %s1921_s16  }
  0x3b   : > { %s394_s17 = sshll.u32 %s1484_s11, 4  ;;  %s420_s14 = scalar_lea.hbm %s1923_s0, %s1648_s15  ;;  %s395_s17 = int_to_ptr.vmem [resolvable:$true] %s394_s17 }
  0x3c   : > { %1056 = dma.hbm_to_vmem [thread:$0]  (!%p1595_p5), %s393_s1, 512, %s395_s17, [#allocation12], %s1922_s28, %s1922_s28, %s1921_s16  }
  0x3d   : > { %s424_s29 = sshll.u32 %s415_s9, 4  ;;  %s422_s5 = sshll.u32 %s420_s14, 4  ;;  %s425_s29 = int_to_ptr.vmem [resolvable:$true] %s424_s29  ;;  %s423_s5 = int_to_ptr.hbm [resolvable:$true] %s422_s5 }
  0x3e   : > { %s1924_s22 = sand.u32 1, %s1466_s19   ;;  %s1925_s2 = sld [smem:[#allocation32_spill]] }
  0x3f   : > { %s412_s12 = scalar_lea.sflag [#allocation3], %s1924_s22  ;;  %s455_s10 = scalar_lea.vmem [#allocation7], %s1645_s3 }
  0x40   : > { %1060 = dma.hbm_to_vmem [thread:$0]  (!%p1652_p8), %s423_s5, 128, %s425_s29, %s412_s12  }
  0x41   : > { %s464_s8 = sshll.u32 %s455_s10, 4  ;;  %s1703_s28 = sand.u32 (!%p1587_p3), 1, %s1462_s18   ;;  %s465_s8 = int_to_ptr.vmem [resolvable:$true] %s464_s8 }
  0x42   : > { %473 = sbr.rel (%p1587_p3) target bundleno = 365 (0x16d), region = 56  ;;  %s1706_s5 = sshll.u32 (!%p1587_p3), %s1703_s28, 3 }
  0x43   : > { %s479_s3 = scalar_lea.vmem (!%p1587_p3), [#allocation2], %s1706_s5 }
  0x44   : > { %s460_s7 = scalar_lea.hbm %s1925_s2, %s1648_s15  ;;  %s476_s15 = scalar_lea.sflag (!%p1587_p3), [#allocation3], %s1703_s28 }
  0x45   : > { %s462_s1 = sshll.u32 %s460_s7, 4  ;;  %s463_s1 = int_to_ptr.hbm [resolvable:$true] %s462_s1 }
  0x46   : > { %1066 = dma.hbm_to_vmem [thread:$0]  (!%p1652_p8), %s463_s1, 128, %s465_s8, %s1662_s24  }
  0x47   : > { %1433 = dma.done.wait (%p1621_p12), %s476_s15, 128  }
  0x48   : > { %1435 = vsyncadd (%p1621_p12), %s476_s15, 4294967168  ;;  %s485_s7 = sand.u32 1, %s1579_s23   ;;  %s489_s10 = scalar_lea.vmem [#allocation5], %s1706_s5 }
  0x49   : > { %s486_s8 = scalar_lea.sflag [#allocation6], %s485_s7 }
  0x4a   : > { %1437 = dma.done.wait (%p1621_p12), %s486_s8, 256  }
  0x4b   : > { %1439 = vsyncadd (%p1621_p12), %s486_s8, 4294967040  ;;  %s499_s27 = scalar_lea.vmem [#allocation7], %s1706_s5 }
  0x4c   : > { %1441 = dma.done.wait (%p71_p1), [#allocation9], 1024  }
  0x4d   : > { %1443 = vsyncadd (%p71_p1), [#allocation9], 4294966272 }
  0x4e   : > { %1445 = dma.done.wait (%p71_p1), [#allocation12], 512  }
  0x4f   : > { %1447 = vsyncadd (%p71_p1), [#allocation12], 4294966784  ;;  %v618_v0 = vld [vmem:[#allocation10 + $0x18] sm:$0xff]  ;;  %v617_v1 = vld [vmem:[#allocation10 + $0x10] sm:$0xff]  ;;  %vm583_vm0 = vcmask 261120   ;;  %s1000_s24 = sshll.u32 %s1703_s28, 4 }
  0x50   : > { %v657_v2 = vld [vmem:[#allocation11 + $0x18] sm:$0xff]  ;;  %638 = vmatpush.msra.mxu1 %v618_v0  ;;  %v656_v3 = vld [vmem:[#allocation11 + $0x10] sm:$0xff]  ;;  %v616_v4 = vld [vmem:[#allocation10 + $0x8] sm:$0xff]  ;;  %s1485_s21 = smov 96   ;;  %s1926_s9 = sld [smem:[#allocation36_spill]] }
  0x51   : > { %677 = vmatpush.msra.mxu2 %v657_v2  ;;  %v655_v5 = vld [vmem:[#allocation11 + $0x8] sm:$0xff]  ;;  %v578_v6 = vld [vmem:[#allocation8 + $0x18] sm:$0xff]  ;;  %v577_v7 = vld [vmem:[#allocation8 + $0x10] sm:$0xff]  ;;  %s566_s29 = scalar_lea.vmem [#allocation14], %s1000_s24  ;;  %s1747_s22 = scalar_lea.vmem [#allocation13], %s1000_s24 }
  0x52   : > { %639 = vmatpush.msra.mxu1 %v617_v1  ;;  %v615_v8 = vld [vmem:[#allocation10] sm:$0xff]  ;;  %599 = vmatpush.msra.mxu0 %v578_v6  ;;  %v653_v11 = vld [vmem:[%s499_s27] sm:$0xff]  ;;  %v576_v12 = vld [vmem:[#allocation8 + $0x8] sm:$0xff]  ;;  %s1751_s12 = scalar_lea.vmem [#allocation16], %s1000_s24  ;;  %s1756_s30 = sshll.u32 %s1470_s20, 4 }
  0x53   : > { %678 = vmatpush.msra.mxu2 %v656_v3  ;;  %v614_v9 = vld [vmem:[%s489_s10] sm:$0xff]  ;;  %v574_v14 = vld [vmem:[%s479_s3] sm:$0xff]  ;;  %s1927_s5 = sld [smem:[#allocation38_spill]]  ;;  %s734_s8 = sshll.u32 %s566_s29, 4  ;;  %s735_s8 = int_to_ptr.vmem [resolvable:$true] %s734_s8 }
  0x54   : > { %v654_v10 = vld [vmem:[#allocation11] sm:$0xff]  ;;  %640 = vmatpush.msra.mxu1 %v616_v4  ;;  %600 = vmatpush.msra.mxu0 %v577_v7  ;;  %v1141_v15 = vld [vmem:[%s1870_s6] ss:$0 sm:$0xff]  ;;  %s1929_s26 = sld [smem:[#allocation39_spill]]  ;;  %s752_s20 = sshll.u32 %s1751_s12, 4  ;;  %s753_s20 = int_to_ptr.vmem [resolvable:$true] %s752_s20 }
  0x55   : > { %679 = vmatpush.msra.mxu2 %v655_v5  ;;  %v575_v13 = vld [vmem:[#allocation8] sm:$0xff]  ;;  %v1142_v18 = vld [vmem:[%s1868_s4] ss:$0 sm:$0xff]  ;;  %s1779_s11 = scalar_lea.sflag [#allocation15], %s485_s7 }
  0x56   : > { %641 = vmatpush.msra.mxu1 %v615_v8  ;;  %601 = vmatpush.msra.mxu0 %v576_v12  ;;  %v1143_v19 = vld [vmem:[%s1926_s9] ss:$0 sm:$0xff] }
  0x57   : > { %680 = vmatpush.msra.mxu2 %v654_v10  ;;  %1005 = vmatmul.msk.f32.vlgmr.msra.gmra.mxu1 %vm583_vm0, %v614_v9 }
  0x58   : > { %1007 = vmatmul.msk.f32.vlgmr.msra.gmra.mxu2 %vm583_vm0, %v653_v11  ;;  %602 = vmatpush.msra.mxu0 %v575_v13 }
  0x59   : > { %1003 = vmatmul.msk.f32.vlgmr.msra.gmra.mxu0 %vm583_vm0, %v574_v14  ;;  %s733_s15 = scalar_lea.hbm %s1927_s5, %s1756_s30 }
  0x5a   : > { %s1762_s10 = sshll.u32 %s733_s15, 4  ;;  %s751_s24 = scalar_lea.hbm %s1929_s26, %s1756_s30  ;;  %s737_s10 = int_to_ptr.hbm [resolvable:$true] %s1762_s10 }
  0x5b   : > { %s1775_s9 = sshll.u32 %s751_s24, 4  ;;  %s1338_s1 = sshra.s32 %s737_s10, 4  ;;  %s1339_s1 = int_to_ptr.hbm [resolvable:$true] %s1338_s1  ;;  %s755_s9 = int_to_ptr.hbm [resolvable:$true] %s1775_s9 }
  0x5c   : > { %s1340_s15 = scalar_lea.hbm %s1339_s1, 16  ;;  %p1345_p10 = scmp.lt.s32.totalorder %s1339_s1, %s1927_s5 }
  0x5d   : > { %p1341_p1 = scmp.ne.s32.totalorder %s1339_s1, %s1340_s15 }
  0x5f   : > { %p1342_p3 = pnand %p1341_p1, %p1630_p4 }
  0x61   : > { %p1343_p5 = pneg %p1342_p3 }
  0xd4   : > { %v643_v16 = vpop.f32.mrf.mxu1 }
  0xd5   : > { %v644_v17 = vadd.f32 %v1141_v15, %v643_v16 }
  0xd6   : > { %v604_v20 = vpop.f32.mrf.mxu0 }
  0xd7   : > { %648 = vrot.lane.b32.xlu0 %v644_v17, %s1485_s21  ;;  %646 = vst.msk [vmem:[%s566_s29] sm:$0xff] %vm583_vm0, %v644_v17  ;;  %v605_v21 = vadd.f32 %v1142_v18, %v604_v20 }
  0xd9   : > { %607 = vst.msk [vmem:[%s1747_s22] sm:$0xff] %vm583_vm0, %v605_v21 }
  0xdb   : > { %v682_v22 = vpop.f32.mrf.mxu2 }
  0xdc   : > { %v683_v23 = vadd.f32 %v1143_v19, %v682_v22 }
  0xde   : > { %687 = vrot.lane.b32.xlu1 %v683_v23, %s1485_s21  ;;  %685 = vst.msk [vmem:[%s1751_s12] sm:$0xff] %vm583_vm0, %v683_v23 }
  0xdf   : > { %609 = vrot.lane.b32.xlu0 %v605_v21, %s1485_s21  ;;  %s1930_s21 = sld [smem:[#allocation37_spill]] }
  0xe5   : > { %s1931_s13 = smov %s1930_s21  ;;  %s715_s14 = scalar_lea.hbm %s1930_s21, %s1756_s30 }
 0x149   : > { %v649_v24 = vpop.permute.xlu0 %648 }
 0x14a   : > { %1006 = vst.msk [vmem:[%s566_s29 + $0x8] sm:$0xff] %vm583_vm0, %v649_v24  ;;  %s1344_s29 = scalar_lea.hbm %s1927_s5, 32 }
 0x14b   : > { %p1346_p11 = scmp.lt.s32.totalorder %s1344_s29, %s1340_s15 }
 0x14d   : > { %p1347_p12 = por %p1346_p11, %p1345_p10 }
 0x14f   : > { %p1348_p13 = pnand %p1347_p12, %p1343_p5 }
 0x151   : > { %1351 = shalt.err (!%p1348_p13)
}
 0x152   : > { %s1486_s23 = smov 128   ;;  %s1487_s7 = smov 8   ;;  %v688_v25 = vpop.permute.xlu1 %687  ;;  %v610_v26 = vpop.permute.xlu0 %609 }
 0x153   : > { %1042 = dma.vmem_to_hbm [thread:$0]  (%p1630_p4), %s735_s8, 256, %s737_s10, %s1779_s11, %s1486_s23, %s1486_s23, %s1487_s7  }
 0x154   : > { %s716_s30 = sshll.u32 %s1747_s22, 4  ;;  %s1796_s0 = sshll.u32 %s715_s14, 4  ;;  %1008 = vst.msk [vmem:[%s1751_s12 + $0x8] sm:$0xff] %vm583_vm0, %v688_v25  ;;  %s1799_s30 = int_to_ptr.vmem [resolvable:$true] %s716_s30  ;;  %s719_s0 = int_to_ptr.hbm [resolvable:$true] %s1796_s0 }
 0x155   : > { %s1366_s2 = sshra.s32 %s755_s9, 4  ;;  %s1372_s16 = scalar_lea.hbm %s1929_s26, 32  ;;  %s1367_s2 = int_to_ptr.hbm [resolvable:$true] %s1366_s2 }
 0x156   : > { %s1368_s24 = scalar_lea.hbm %s1367_s2, 16  ;;  %p1373_p8 = scmp.lt.s32.totalorder %s1367_s2, %s1929_s26 }
 0x157   : > { %p1369_p0 = scmp.ne.s32.totalorder %s1367_s2, %s1368_s24  ;;  %p1374_p1 = scmp.lt.s32.totalorder %s1372_s16, %s1368_s24 }
 0x159   : > { %p1370_p2 = pnand %p1369_p0, %p1630_p4  ;;  %p1375_p3 = por %p1374_p1, %p1373_p8 }
 0x15b   : > { %p1371_p7 = pneg %p1370_p2 }
 0x15d   : > { %p1376_p5 = pnand %p1375_p3, %p1371_p7 }
 0x15f   : > { %1379 = shalt.err (!%p1376_p5)
}
 0x160   : > { %1043 = dma.vmem_to_hbm [thread:$0]  (%p1630_p4), %s753_s20, 256, %s755_s9, %s1779_s11, %s1486_s23, %s1486_s23, %s1487_s7  }
 0x161   : > { %1004 = vst.msk [vmem:[%s1747_s22 + $0x8] sm:$0xff] %vm583_vm0, %v610_v26  ;;  %s693_s12 = scalar_lea.sflag [#allocation4], %s1703_s28  ;;  %s1394_s14 = sshra.s32 %s719_s0, 4  ;;  %s1395_s14 = int_to_ptr.hbm [resolvable:$true] %s1394_s14 }
 0x162   : > { %s1396_s1 = scalar_lea.hbm %s1395_s14, 16  ;;  %s1400_s25 = scalar_lea.hbm %s1931_s13, 32 }
 0x163   : > { %p1397_p10 = scmp.ne.s32.totalorder %s1395_s14, %s1396_s1  ;;  %p1401_p13 = scmp.lt.s32.totalorder %s1395_s14, %s1931_s13 }
 0x164   : > { %p1402_p0 = scmp.lt.s32.totalorder %s1400_s25, %s1396_s1 }
 0x165   : > { %p1398_p11 = pnand %p1397_p10, %p1630_p4 }
 0x166   : > { %p1403_p2 = por %p1402_p0, %p1401_p13 }
 0x167   : > { %p1399_p12 = pneg %p1398_p11 }
 0x169   : > { %p1404_p7 = pnand %p1403_p2, %p1399_p12 }
 0x16b   : > { %1407 = shalt.err (!%p1404_p7)
}
 0x16c   : > { %1041 = dma.vmem_to_hbm [thread:$0]  (%p1630_p4), %s1799_s30, 256, %s719_s0, %s693_s12, %s1486_s23, %s1486_s23, %s1487_s7  }
 0x16d PF: > { %s1932_s28 = sld [smem:[#allocation23_spill]]  ;;  %p1068_p8 = pnand %p986_p6, %p1638_p9 }
 0x16e   : > { %s1934_s20 = sld [smem:[#allocation25_spill]] }
 0x16f   : > { %p1069_p1 = pneg %p1068_p8 }
 0x173   : > { %s769_s9 = sand.u32 1, %s1932_s28  }
 0x174   : > { %s770_s11 = scalar_lea.sflag [#allocation4], %s769_s9 }
 0x175   : > { %1449 = dma.done.wait (%p1069_p1), %s770_s11, 256  }
 0x176   : > { %1451 = vsyncadd (%p1069_p1), %s770_s11, 4294967040  ;;  %s1935_s3 = sadd.s32 4294967294, %s1934_s20  }
 0x177   : > { %s779_s24 = sand.u32 1, %s1935_s3  }
 0x178   : > { %s780_s8 = scalar_lea.sflag [#allocation15], %s779_s24 }
 0x179   : > { %1453 = dma.done.wait (%p1069_p1), %s780_s8, 512  }
 0x17a   : > { %1455 = vsyncadd (%p1069_p1), %s780_s8, 4294966784  ;;  %s36_s22 = sadd.s32 1, %s1934_s20   ;;  %s1936_s23 = sld [smem:[#allocation28_spill]] }
 0x17b   : > { %p33_p4 = scmp.ge.s32.totalorder %s36_s22, 4   ;;  %s1937_s20 = sld [smem:[#allocation24_spill]] }
 0x17c   : > { %s1938_s21 = sld [smem:[#allocation26_spill]]  ;;  %s1939_s17 = smov %s1462_s18 }
 0x17d   : > { %s1940_s18 = smov %s1466_s19  ;;  %35 = sbr.rel (!%p33_p4) target bundleno = 23 (0x17), region = 172 }
 0x180   : > { %s1941_s19 = smov %s1936_s23 }
 0x182   :  { %796 = vsyncpa [#allocation3], 1 }
 0x183   :  { %798 = vsyncpa [#allocation3 + $0x1], 1 }
 0x184   :  { %799 = vsyncpa [#allocation6], 1 }
 0x185   :  { %801 = vsyncpa [#allocation6 + $0x1], 1 }
 0x186   :  { %802 = vsyncpa [#allocation9], 1 }
 0x187   :  { %803 = vsyncpa [#allocation12], 1 }
 0x188   :  { %804 = vsyncpa [#allocation4], 1 }
 0x189   :  { %806 = vsyncpa [#allocation4 + $0x1], 1 }
 0x18a   :  { %807 = vsyncpa [#allocation15], 1 }
 0x18b   :  { %809 = vsyncpa [#allocation15 + $0x1], 1 }

</bundles_post_ra>
